<compile_context>
chip_gen: v7x
topology: tpu7x:2x2x1
jax: 0.10.0
libtpu: 0.0.40
codegen_flags: <defaults>
</compile_context>

<pallas_src>
import functools
import numpy as np
import jax
import jax.numpy as jnp
from jax.experimental import pallas as pl
from jax.experimental.pallas import tpu as pltpu

TWOPI = 2.0 * np.pi
LANE = 128
SUBLANE = 8
MAX_BLOCK_ROWS = 512  # 512x128 f32 = 256 KiB/block; tiny vs VMEM on v5e/v6e/v7x


def fourier_kernel(w_ref, t_ref, o_ref, *, freqs, n):
    # w_ref: SMEM (2n,) f32 — linear weights (first n: cos, last n: sin)
    # t_ref: VMEM (block_rows, 128) f32 — lane-dense batch of time values
    # o_ref: VMEM (block_rows, 128) f32 — lane-dense output
    t = t_ref[...]
    acc = jnp.zeros_like(t)
    for k in range(n):          # static unroll (n is small, e.g. 7)
        arg = t * freqs[k]      # freqs[k] is a Python float constant
        acc = acc + w_ref[k] * jnp.cos(arg) + w_ref[n + k] * jnp.sin(arg)
    o_ref[...] = acc


def fourier_model(t, weight, *, p=365.25, scale=1.0, n=7):
    """t: [B, 1] float, weight: [1, 2n] float -> [B, 1] float32."""
    assert n > 0
    B = t.shape[0]

    # Lane-dense layout: pad B up to R_pad*128 elements, view as [R_pad, 128].
    R = -(-B // LANE)                                   # rows needed
    R8 = -(-R // SUBLANE) * SUBLANE                     # sublane-aligned rows
    block_rows = min(MAX_BLOCK_ROWS, R8)
    R_pad = -(-R8 // block_rows) * block_rows           # multiple of block_rows
    total = R_pad * LANE

    t_flat = t.reshape(-1).astype(jnp.float32)
    t2d = jnp.zeros((total,), jnp.float32).at[:B].set(t_flat).reshape(R_pad, LANE)

    w = weight.reshape(-1).astype(jnp.float32)          # (2n,)
    freqs = tuple(float(TWOPI * (k + 1) * scale / p) for k in range(n))

    grid = (R_pad // block_rows,)

    out2d = pl.pallas_call(
        functools.partial(fourier_kernel, freqs=freqs, n=n),
        out_shape=jax.ShapeDtypeStruct((R_pad, LANE), jnp.float32),
        grid=grid,
        in_specs=[
            pl.BlockSpec(memory_space=pltpu.MemorySpace.SMEM),     # weights (2n,)
            pl.BlockSpec((block_rows, LANE), lambda i: (i, 0)),    # t slab
        ],
        out_specs=pl.BlockSpec((block_rows, LANE), lambda i: (i, 0)),
        compiler_params=pltpu.CompilerParams(
            dimension_semantics=("parallel",)),
    )(w, t2d)

    # Slice off lane padding and restore [B, 1].
    return out2d.reshape(-1)[:B].reshape(B, 1)


def fourier_model_ref(t, weight, *, p=365.25, scale=1.0, n=7):
    """Pure-JAX reference mirroring the PyTorch forward exactly."""
    cos = [jnp.cos(TWOPI * k * t / (p / scale)) for k in range(1, n + 1)]
    sin = [jnp.sin(TWOPI * k * t / (p / scale)) for k in range(1, n + 1)]
    feats = jnp.concatenate(cos + sin, axis=1)  # (B, 2n)
    return feats @ weight.T                     # (B, 1)


if __name__ == "__main__":
    key = jax.random.PRNGKey(0)
    k_t, k_w = jax.random.split(key)

    n = 7
    p = 365.25
    scale = 1.0
    B = 200  # not a multiple of 128: exercises lane padding + slicing

    # Time values roughly spanning a couple of periods.
    t = jax.random.uniform(k_t, (B, 1), dtype=jnp.float32,
                           minval=0.0, maxval=2.0 * p)

    # Deterministic init matching nn.Linear(2n, 1, bias=False):
    # uniform(-1/sqrt(2n), 1/sqrt(2n)), shape (out, in) = (1, 2n).
    bound = 1.0 / np.sqrt(2 * n)
    weight = jax.random.uniform(k_w, (1, 2 * n), dtype=jnp.float32,
                                minval=-bound, maxval=bound)

    out = fourier_model(t, weight, p=p, scale=scale, n=n)
    out = jax.block_until_ready(out)

    ref = fourier_model_ref(t, weight, p=p, scale=scale, n=n)
    np.testing.assert_allclose(np.asarray(out), np.asarray(ref),
                               rtol=1e-5, atol=1e-5)

    print("KERNEL_OK")
</pallas_src>

<mosaic_0001>
module attributes {stable_mosaic.version = 11 : i64} {
  func.func @fourier_kernel(%arg0: i32, %arg1: memref<14xf32, #tpu.memory_space<smem>>, %arg2: memref<8x128xf32, #tpu.memory_space<vmem>>, %arg3: memref<8x128xf32, #tpu.memory_space<vmem>>) attributes {dimension_semantics = [#tpu.dimension_semantics<parallel>], iteration_bounds = array<i64: 1>, scalar_prefetch = 0 : i64, scratch_operands = 0 : i64, tpu.core_type = #tpu.core_type<tc>, window_params = [{transform_indices = @transform_0, window_bounds = array<i64: 14>}, {transform_indices = @transform_1, window_bounds = array<i64: 8, 128>}, {transform_indices = @transform_2, window_bounds = array<i64: 8, 128>}]} {
    %c0 = arith.constant 0 : index
    %c0_0 = arith.constant 0 : index
    %0 = vector.load %arg2[%c0, %c0_0] : memref<8x128xf32, #tpu.memory_space<vmem>>, vector<8x128xf32>
    %cst = arith.constant 0.000000e+00 : f32
    %1 = vector.broadcast %cst : f32 to vector<8x128xf32>
    %cst_1 = arith.constant 0.0172024239 : f32
    %2 = vector.broadcast %cst_1 : f32 to vector<8x128xf32>
    %3 = arith.mulf %0, %2 : vector<8x128xf32>
    %c0_2 = arith.constant 0 : index
    %4 = memref.load %arg1[%c0_2] : memref<14xf32, #tpu.memory_space<smem>>
    %5 = math.cos %3 : vector<8x128xf32>
    %6 = vector.broadcast %4 : f32 to vector<8x128xf32>
    %7 = arith.mulf %6, %5 : vector<8x128xf32>
    %8 = arith.addf %1, %7 : vector<8x128xf32>
    %c7 = arith.constant 7 : index
    %9 = memref.load %arg1[%c7] : memref<14xf32, #tpu.memory_space<smem>>
    %10 = math.sin %3 : vector<8x128xf32>
    %11 = vector.broadcast %9 : f32 to vector<8x128xf32>
    %12 = arith.mulf %11, %10 : vector<8x128xf32>
    %13 = arith.addf %8, %12 : vector<8x128xf32>
    %cst_3 = arith.constant 0.0344048478 : f32
    %14 = vector.broadcast %cst_3 : f32 to vector<8x128xf32>
    %15 = arith.mulf %0, %14 : vector<8x128xf32>
    %c1 = arith.constant 1 : index
    %16 = memref.load %arg1[%c1] : memref<14xf32, #tpu.memory_space<smem>>
    %17 = math.cos %15 : vector<8x128xf32>
    %18 = vector.broadcast %16 : f32 to vector<8x128xf32>
    %19 = arith.mulf %18, %17 : vector<8x128xf32>
    %20 = arith.addf %13, %19 : vector<8x128xf32>
    %c8 = arith.constant 8 : index
    %21 = memref.load %arg1[%c8] : memref<14xf32, #tpu.memory_space<smem>>
    %22 = math.sin %15 : vector<8x128xf32>
    %23 = vector.broadcast %21 : f32 to vector<8x128xf32>
    %24 = arith.mulf %23, %22 : vector<8x128xf32>
    %25 = arith.addf %20, %24 : vector<8x128xf32>
    %cst_4 = arith.constant 0.0516072698 : f32
    %26 = vector.broadcast %cst_4 : f32 to vector<8x128xf32>
    %27 = arith.mulf %0, %26 : vector<8x128xf32>
    %c2 = arith.constant 2 : index
    %28 = memref.load %arg1[%c2] : memref<14xf32, #tpu.memory_space<smem>>
    %29 = math.cos %27 : vector<8x128xf32>
    %30 = vector.broadcast %28 : f32 to vector<8x128xf32>
    %31 = arith.mulf %30, %29 : vector<8x128xf32>
    %32 = arith.addf %25, %31 : vector<8x128xf32>
    %c9 = arith.constant 9 : index
    %33 = memref.load %arg1[%c9] : memref<14xf32, #tpu.memory_space<smem>>
    %34 = math.sin %27 : vector<8x128xf32>
    %35 = vector.broadcast %33 : f32 to vector<8x128xf32>
    %36 = arith.mulf %35, %34 : vector<8x128xf32>
    %37 = arith.addf %32, %36 : vector<8x128xf32>
    %cst_5 = arith.constant 0.0688096955 : f32
    %38 = vector.broadcast %cst_5 : f32 to vector<8x128xf32>
    %39 = arith.mulf %0, %38 : vector<8x128xf32>
    %c3 = arith.constant 3 : index
    %40 = memref.load %arg1[%c3] : memref<14xf32, #tpu.memory_space<smem>>
    %41 = math.cos %39 : vector<8x128xf32>
    %42 = vector.broadcast %40 : f32 to vector<8x128xf32>
    %43 = arith.mulf %42, %41 : vector<8x128xf32>
    %44 = arith.addf %37, %43 : vector<8x128xf32>
    %c10 = arith.constant 10 : index
    %45 = memref.load %arg1[%c10] : memref<14xf32, #tpu.memory_space<smem>>
    %46 = math.sin %39 : vector<8x128xf32>
    %47 = vector.broadcast %45 : f32 to vector<8x128xf32>
    %48 = arith.mulf %47, %46 : vector<8x128xf32>
    %49 = arith.addf %44, %48 : vector<8x128xf32>
    %cst_6 = arith.constant 0.0860121175 : f32
    %50 = vector.broadcast %cst_6 : f32 to vector<8x128xf32>
    %51 = arith.mulf %0, %50 : vector<8x128xf32>
    %c4 = arith.constant 4 : index
    %52 = memref.load %arg1[%c4] : memref<14xf32, #tpu.memory_space<smem>>
    %53 = math.cos %51 : vector<8x128xf32>
    %54 = vector.broadcast %52 : f32 to vector<8x128xf32>
    %55 = arith.mulf %54, %53 : vector<8x128xf32>
    %56 = arith.addf %49, %55 : vector<8x128xf32>
    %c11 = arith.constant 11 : index
    %57 = memref.load %arg1[%c11] : memref<14xf32, #tpu.memory_space<smem>>
    %58 = math.sin %51 : vector<8x128xf32>
    %59 = vector.broadcast %57 : f32 to vector<8x128xf32>
    %60 = arith.mulf %59, %58 : vector<8x128xf32>
    %61 = arith.addf %56, %60 : vector<8x128xf32>
    %cst_7 = arith.constant 0.10321454 : f32
    %62 = vector.broadcast %cst_7 : f32 to vector<8x128xf32>
    %63 = arith.mulf %0, %62 : vector<8x128xf32>
    %c5 = arith.constant 5 : index
    %64 = memref.load %arg1[%c5] : memref<14xf32, #tpu.memory_space<smem>>
    %65 = math.cos %63 : vector<8x128xf32>
    %66 = vector.broadcast %64 : f32 to vector<8x128xf32>
    %67 = arith.mulf %66, %65 : vector<8x128xf32>
    %68 = arith.addf %61, %67 : vector<8x128xf32>
    %c12 = arith.constant 12 : index
    %69 = memref.load %arg1[%c12] : memref<14xf32, #tpu.memory_space<smem>>
    %70 = math.sin %63 : vector<8x128xf32>
    %71 = vector.broadcast %69 : f32 to vector<8x128xf32>
    %72 = arith.mulf %71, %70 : vector<8x128xf32>
    %73 = arith.addf %68, %72 : vector<8x128xf32>
    %cst_8 = arith.constant 0.120416969 : f32
    %74 = vector.broadcast %cst_8 : f32 to vector<8x128xf32>
    %75 = arith.mulf %0, %74 : vector<8x128xf32>
    %c6 = arith.constant 6 : index
    %76 = memref.load %arg1[%c6] : memref<14xf32, #tpu.memory_space<smem>>
    %77 = math.cos %75 : vector<8x128xf32>
    %78 = vector.broadcast %76 : f32 to vector<8x128xf32>
    %79 = arith.mulf %78, %77 : vector<8x128xf32>
    %80 = arith.addf %73, %79 : vector<8x128xf32>
    %c13 = arith.constant 13 : index
    %81 = memref.load %arg1[%c13] : memref<14xf32, #tpu.memory_space<smem>>
    %82 = math.sin %75 : vector<8x128xf32>
    %83 = vector.broadcast %81 : f32 to vector<8x128xf32>
    %84 = arith.mulf %83, %82 : vector<8x128xf32>
    %85 = arith.addf %80, %84 : vector<8x128xf32>
    %c0_9 = arith.constant 0 : index
    %c0_10 = arith.constant 0 : index
    %86 = vector.load %arg3[%c0_9, %c0_10] : memref<8x128xf32, #tpu.memory_space<vmem>>, vector<8x128xf32>
    tpu.vector_store %arg3[%c0_9, %c0_10], %85 {strides = array<i32>} : memref<8x128xf32, #tpu.memory_space<vmem>>, vector<8x128xf32>,
    return
  }
  func.func @transform_0(%arg0: i32) -> i32 {
    %c0_i32 = arith.constant 0 : i32
    %c0_i32_0 = arith.constant 0 : i32
    return %c0_i32 : i32
  }
  func.func @transform_1(%arg0: i32) -> (i32, i32) {
    %c0_i32 = arith.constant 0 : i32
    %c0_i32_0 = arith.constant 0 : i32
    return %arg0, %c0_i32 : i32, i32
  }
  func.func @transform_2(%arg0: i32) -> (i32, i32) {
    %c0_i32 = arith.constant 0 : i32
    %c0_i32_0 = arith.constant 0 : i32
    return %arg0, %c0_i32 : i32, i32
  }
}

</mosaic_0001>

<bundles_post_ra>
// kernel: tpu_custom_call.1
= control target key start
LH: loop header
LB: loop body
LE: loop exit
PB: predicated region body
PF: predicated region fallthrough
CT: control target
= control target key end

     0   :  { %7 = vsyncpa [#allocation5], 0  ;;  %s2568_s0 = inlined_call_operand.hbm [shape: f32[14], index: 0, kind: input, shape index: {}]   ;;  %s2569_s1 = inlined_call_operand.hbm [shape: f32[8,128], index: 1, kind: input, shape index: {}]   ;;  %s2570_s2 = inlined_call_operand.hbm [shape: f32[8,128], index: 2, kind: output, shape index: {}]  }
   0x1   :  { %8 = vsyncpa [#allocation3], 0 }
   0x2   :  { %9 = vsyncpa [#allocation4], 0  ;;  %s1699_s11 = scalar_lea.hbm %s2568_s0, 16 }
   0x3   :  { %p1700_p0 = scmp.ne.s32.totalorder %s2568_s0, %s1699_s11  ;;  %p1703_p1 = scmp.lt.u32.totalorder %s1699_s11, %s2568_s0 }
   0x5   :  { %p1705_p2 = pnand %p1703_p1, %p1700_p0 }
   0x7   :  { %1708 = shalt.err (!%p1705_p2)
}
   0x8   :  { %s1759_s16 = smov [#allocation2]   ;;  %s1760_s19 = smov [#allocation6]  }
   0x9   :  { %17 = dma.hbm_to_smem %s2568_s0, 16, %s1759_s16, [#allocation5]  }
   0xa   :  { %s24_s20 = sshll.u32 %s1760_s19, 4  ;;  %s1709_s23 = scalar_lea.hbm %s2569_s1, 128  ;;  %s25_s20 = int_to_ptr.vmem [resolvable:$true] %s24_s20 }
   0xb   :  { %p1710_p3 = scmp.ne.s32.totalorder %s2569_s1, %s1709_s23  ;;  %p1713_p4 = scmp.lt.u32.totalorder %s1709_s23, %s2569_s1 }
   0xd   :  { %p1715_p5 = pnand %p1713_p4, %p1710_p3 }
   0xf   :  { %1718 = shalt.err (!%p1715_p5)
}
  0x10   :  { %s1719_s28 = scalar_lea.vmem %s25_s20, 128  ;;  %p1724_p7 = scmp.lt.s32.totalorder %s25_s20, %s25_s20 }
  0x11   :  { %p1720_p6 = scmp.ne.s32.totalorder %s25_s20, %s1719_s28  ;;  %p1725_p8 = scmp.lt.s32.totalorder %s1719_s28, %s1719_s28 }
  0x13   :  { %p1726_p9 = por %p1725_p8, %p1724_p7 }
  0x15   :  { %p1727_p10 = pnand %p1726_p9, %p1720_p6 }
  0x17   :  { %1730 = shalt.err (!%p1727_p10)
}
  0x18   :  { %27 = dma.hbm_to_vmem [thread:$0]  %s2569_s1, 128, %s25_s20, [#allocation3]  }
  0x19   :  { %1753 = dma.done.wait [#allocation5], 16  }
  0x1a   :  { %1754 = vsyncadd [#allocation5], 4294967280 }
  0x1b   :  { %1755 = dma.done.wait [#allocation3], 128  }
  0x1c   :  { %1756 = vsyncadd [#allocation3], 4294967168 }
  0x1d   :  { %34 = sfence }
  0x1e   :  { %v1807_v0 = vld [vmem:[#allocation6] sm:$0xff]  ;;  %v1761_v17 = vmov 683565275   ;;  %v1762_v19 = vmov 2475754826   ;;  %s2069_s1 = sld [smem:[#allocation2]] }
  0x1f   :  { %v1810_v1 = vmul.f32 0.017202424, %v1807_v0  ;;  %v1814_v3 = vmul.f32 0.034404848, %v1807_v0  ;;  %v1763_v21 = vmov 2131351028  }
  0x20   :  { %v1764_v24 = vmov 2102212464   ;;  %v1765_v26 = vmov 920167782   ;;  %v1831_v31 = vmul.f32 0.05160727, %v1807_v0 }
  0x21   :  { %v41_v2 = vand.u32 2139095040, %v1810_v1  ;;  %v257_v5 = vand.u32 2139095040, %v1814_v3  ;;  %v38_v7 = vand.u32 2147483647, %v1810_v1  ;;  %v1766_v33 = vmov 1326507024  }
  0x22   :  { %v473_v52 = vand.u32 2139095040, %v1831_v31  ;;  %v254_v59 = vand.u32 2147483647, %v1814_v3  ;;  %s2073_s30 = sld [smem:[#allocation2 + $0x7]]  ;;  %s2093_s3 = sld [smem:[#allocation2 + $0x1]] }
  0x23   :  { %v42_v4 = vshrl.u32 %v41_v2, 23  ;;  %v258_v8 = vshrl.u32 %v257_v5, 23  ;;  %v45_v11 = vand.u32 8388607, %v38_v7  ;;  %s2095_s4 = sld [smem:[#allocation2 + $0x8]]  ;;  %s2126_s5 = sld [smem:[#allocation2 + $0x2]] }
  0x24   :  { %s2128_s6 = sld [smem:[#allocation2 + $0x9]]  ;;  %s2482_s7 = sld [smem:[#allocation2 + $0x3]] }
  0x25   :  { %v1565_v6 = vadd.s32 4294967169, %v42_v4  ;;  %v1575_v10 = vadd.s32 4294967169, %v258_v8  ;;  %v46_v23 = vor.u32 8388608, %v45_v11  ;;  %v474_v4 = vshrl.u32 %v473_v52, 23  ;;  %s2500_s8 = sld [smem:[#allocation2 + $0xa]]  ;;  %s2519_s9 = sld [smem:[#allocation2 + $0x4]] }
  0x26   :  { %s2524_s10 = sld [smem:[#allocation2 + $0xb]]  ;;  %s2533_s11 = sld [smem:[#allocation2 + $0x5]] }
  0x27   :  { %v48_v9 = vadd.s32 1, %v1565_v6  ;;  %v264_v13 = vadd.s32 1, %v1575_v10  ;;  %v86_v44 = vshll.u32 %v46_v23, 8  ;;  %v1585_v23 = vadd.s32 4294967169, %v474_v4  ;;  %s1619_s12 = sld [smem:[#allocation2 + $0xc]]  ;;  %s2547_s13 = sld [smem:[#allocation2 + $0x6]] }
  0x28   :  { %s2549_s14 = sld [smem:[#allocation2 + $0xd]]  ;;  %s1767_s15 = smov [#allocation7]  }
  0x29   :  { %vm49_vm0 = vcmp.gt.s32.totalorder %v48_v9, 0  ;;  %vm265_vm1 = vcmp.gt.s32.totalorder %v264_v13, 0  ;;  %s1555_s16 = sshll.u32 %s1767_s15, 4  ;;  %s1556_s16 = int_to_ptr.vmem [resolvable:$true] %s1555_s16 }
  0x2a   :  { %v50_v12 = vsel %vm49_vm0, %v48_v9, 0  ;;  %v266_v38 = vsel %vm265_vm1, %v264_v13, 0  ;;  %s1731_s17 = scalar_lea.vmem %s1556_s16, 128  ;;  %p1736_p12 = scmp.lt.s32.totalorder %s1556_s16, %s1556_s16 }
  0x2b   :  { %v52_v14 = vand.u32 31, %v50_v12  ;;  %v1820_v15 = vshrl.u32 %v50_v12, 5  ;;  %v268_v41 = vand.u32 31, %v266_v38  ;;  %v1869_v62 = vshrl.u32 %v266_v38, 5  ;;  %p1732_p11 = scmp.ne.s32.totalorder %s1556_s16, %s1731_s17  ;;  %p1737_p13 = scmp.lt.s32.totalorder %s1731_s17, %s1731_s17 }
  0x2d   :  { %v53_v16 = vsub.s32 32, %v52_v14  ;;  %v55_v18 = vshll.u32 %v1761_v17, %v52_v14  ;;  %v58_v20 = vshll.u32 %v1762_v19, %v52_v14  ;;  %v61_v22 = vshll.u32 %v1763_v21, %v52_v14  ;;  %p1738_p0 = por %p1737_p13, %p1736_p12 }
  0x2e   :  { %v64_v25 = vshll.u32 %v1764_v24, %v52_v14  ;;  %v67_v27 = vshll.u32 %v1765_v26, %v52_v14  ;;  %vm70_vm2 = vcmp.lt.s32.totalorder %v1820_v15, 1  ;;  %vm73_vm3 = vcmp.lt.s32.totalorder %v1820_v15, 4 }
  0x2f   :  { %v56_v28 = vshrl.u32 %v1762_v19, %v53_v16  ;;  %v59_v29 = vshrl.u32 %v1763_v21, %v53_v16  ;;  %v62_v30 = vshrl.u32 %v1764_v24, %v53_v16  ;;  %v65_v32 = vshrl.u32 %v1765_v26, %v53_v16  ;;  %p1739_p1 = pnand %p1738_p0, %p1732_p11 }
  0x30   :  { %v68_v34 = vshrl.u32 %v1766_v33, %v53_v16  ;;  %vm72_vm4 = vcmp.lt.s32.totalorder %v1820_v15, 3  ;;  %vm71_vm5 = vcmp.lt.s32.totalorder %v1820_v15, 2  ;;  %v269_v49 = vsub.s32 32, %v268_v41 }
  0x31   :  { %v57_v35 = vor.u32 %v56_v28, %v55_v18  ;;  %v60_v36 = vor.u32 %v59_v29, %v58_v20  ;;  %v63_v37 = vor.u32 %v62_v30, %v61_v22  ;;  %v66_v39 = vor.u32 %v65_v32, %v64_v25 }
  0x32   :  { %v69_v40 = vor.u32 %v68_v34, %v67_v27  ;;  %v54_v53 = vshrl.u32 %v1761_v17, %v53_v16  ;;  %v280_v60 = vshll.u32 %v1764_v24, %v268_v41  ;;  %v281_v61 = vshrl.u32 %v1765_v26, %v269_v49 }
  0x33   :  { %v78_v42 = vsel %vm70_vm2, %v57_v35, %v60_v36  ;;  %v82_v43 = vsel %vm70_vm2, %v60_v36, %v63_v37  ;;  %v79_v45 = vsel %vm73_vm3, %v66_v39, 920167782  ;;  %v75_v56 = vsel %vm73_vm3, %v63_v37, 2102212464 }
  0x34   :  { %v83_v46 = vsel %vm73_vm3, %v69_v40, 1326507024  ;;  %v80_v47 = vsel %vm72_vm4, %v63_v37, %v79_v45  ;;  %v283_v63 = vshll.u32 %v1765_v26, %v268_v41  ;;  %v284_v2 = vshrl.u32 %v1766_v33, %v269_v49 }
  0x35   :  { %v84_v48 = vsel %vm72_vm4, %v66_v39, %v83_v46  ;;  %v81_v50 = vsel %vm71_vm5, %v78_v42, %v80_v47  ;;  %v74_v5 = vsel %vm70_vm2, %v54_v53, %v57_v35  ;;  %v76_v6 = vsel %vm72_vm4, %v60_v36, %v75_v56 }
  0x36   :  { %v85_v51 = vsel %vm71_vm5, %v82_v43, %v84_v48  ;;  %v1857_v54 = vmul.u32.u64.low %v86_v44, %v81_v50  ;;  %v1858_v55 = vmul.u32.u64.high %v86_v44, %v81_v50, %v1857_v54  ;;  %v271_v8 = vshll.u32 %v1761_v17, %v268_v41 }
  0x37   :  { %v1863_v57 = vmul.u32.u64.low %v86_v44, %v85_v51  ;;  %v1864_v58 = vmul.u32.u64.high %v86_v44, %v85_v51, %v1863_v57  ;;  %v272_v9 = vshrl.u32 %v1762_v19, %v269_v49  ;;  %v274_v10 = vshll.u32 %v1762_v19, %v268_v41 }
  0x38   :  { %v275_v11 = vshrl.u32 %v1763_v21, %v269_v49  ;;  %v277_v12 = vshll.u32 %v1763_v21, %v268_v41  ;;  %v278_v13 = vshrl.u32 %v1764_v24, %v269_v49  ;;  %v282_v14 = vor.u32 %v281_v61, %v280_v60 }
  0x39   :  { %v261_v16 = vand.u32 8388607, %v254_v59  ;;  %v285_v18 = vor.u32 %v284_v2, %v283_v63  ;;  %vm289_vm6 = vcmp.lt.s32.totalorder %v1869_v62, 4  ;;  %v77_v20 = vsel %vm71_vm5, %v74_v5, %v76_v6 }
  0x3a   :  { %v96_v22 = vadd.s32 1, %v1858_v55  ;;  %vm95_vm7 = vc.u32 %v1864_v58, %v1857_v54  ;;  %v273_v25 = vor.u32 %v272_v9, %v271_v8  ;;  %v276_v27 = vor.u32 %v275_v11, %v274_v10 }
  0x3b   :  { %v279_v28 = vor.u32 %v278_v13, %v277_v12  ;;  %vm286_vm8 = vcmp.lt.s32.totalorder %v1869_v62, 1  ;;  %vm288_vm9 = vcmp.lt.s32.totalorder %v1869_v62, 3  ;;  %v295_v29 = vsel %vm289_vm6, %v282_v14, 920167782 }
  0x3c   :  { %v93_v30 = vmul.u32 %v86_v44, %v77_v20  ;;  %v262_v32 = vor.u32 8388608, %v261_v16  ;;  %v299_v15 = vsel %vm289_vm6, %v285_v18, 1326507024  ;;  %v480_v34 = vadd.s32 1, %v1585_v23 }
  0x3d   :  { %v97_v35 = vsel %vm95_vm7, %v96_v22, %v1858_v55  ;;  %vm287_vm10 = vcmp.lt.s32.totalorder %v1869_v62, 2  ;;  %v294_v36 = vsel %vm286_vm8, %v273_v25, %v276_v27  ;;  %v296_v37 = vsel %vm288_vm9, %v279_v28, %v295_v29 }
  0x3e   :  { %vm481_vm11 = vcmp.gt.s32.totalorder %v480_v34, 0  ;;  %v298_v38 = vsel %vm286_vm8, %v276_v27, %v279_v28  ;;  %v300_v39 = vsel %vm288_vm9, %v282_v14, %v299_v15  ;;  %v98_v41 = vadd.s32 %v97_v35, %v93_v30 }
  0x3f   :  { %v482_v40 = vsel %vm481_vm11, %v480_v34, 0  ;;  %v302_v42 = vshll.u32 %v262_v32, 8  ;;  %v297_v43 = vsel %vm287_vm10, %v294_v36, %v296_v37  ;;  %v301_v45 = vsel %vm287_vm10, %v298_v38, %v300_v39 }
  0x40   :  { %v484_v44 = vand.u32 31, %v482_v40  ;;  %v99_v46 = vadd.s32 536870912, %v98_v41  ;;  %v270_v47 = vshrl.u32 %v1761_v17, %v269_v49  ;;  %v291_v55 = vsel %vm289_vm6, %v279_v28, 2102212464 }
  0x41   :  { %v1912_v48 = vmul.u32.u64.low %v302_v42, %v297_v43  ;;  %v1913_v50 = vmul.u32.u64.high %v302_v42, %v297_v43, %v1912_v48  ;;  %v1916_v51 = vmul.u32.u64.low %v302_v42, %v301_v45  ;;  %v1917_v52 = vmul.u32.u64.high %v302_v42, %v301_v45, %v1916_v51 }
  0x42   :  { %v485_v53 = vsub.s32 32, %v484_v44  ;;  %v1921_v56 = vshrl.u32 %v99_v46, 30  ;;  %v290_v57 = vsel %vm286_vm8, %v270_v47, %v273_v25  ;;  %v470_v60 = vand.u32 2147483647, %v1831_v31 }
  0x43   :  { %v292_v49 = vsel %vm288_vm9, %v276_v27, %v291_v55  ;;  %v483_v61 = vshrl.u32 %v482_v40, 5  ;;  %v496_v63 = vshll.u32 %v1764_v24, %v484_v44  ;;  %v487_v4 = vshll.u32 %v1761_v17, %v484_v44 }
  0x44   :  { %v497_v2 = vshrl.u32 %v1765_v26, %v485_v53  ;;  %v488_v5 = vshrl.u32 %v1762_v19, %v485_v53  ;;  %v490_v6 = vshll.u32 %v1762_v19, %v484_v44  ;;  %v491_v8 = vshrl.u32 %v1763_v21, %v485_v53 }
  0x45   :  { %v493_v9 = vshll.u32 %v1763_v21, %v484_v44  ;;  %v494_v10 = vshrl.u32 %v1764_v24, %v485_v53  ;;  %v101_v11 = vshll.u32 %v1921_v56, 30  ;;  %v293_v12 = vsel %vm287_vm10, %v290_v57, %v292_v49 }
  0x46   :  { %v312_v13 = vadd.s32 1, %v1913_v50  ;;  %v477_v14 = vand.u32 8388607, %v470_v60  ;;  %vm311_vm12 = vc.u32 %v1917_v52, %v1912_v48  ;;  %v498_v16 = vor.u32 %v497_v2, %v496_v63 }
  0x47   :  { %v499_v18 = vshll.u32 %v1765_v26, %v484_v44  ;;  %v500_v20 = vshrl.u32 %v1766_v33, %v485_v53  ;;  %v489_v22 = vor.u32 %v488_v5, %v487_v4  ;;  %v492_v23 = vor.u32 %v491_v8, %v490_v6 }
  0x48   :  { %vm505_vm13 = vcmp.lt.s32.totalorder %v483_v61, 4  ;;  %v309_v25 = vmul.u32 %v302_v42, %v293_v12  ;;  %v495_v27 = vor.u32 %v494_v10, %v493_v9  ;;  %vm502_vm14 = vcmp.lt.s32.totalorder %v483_v61, 1 }
  0x49   :  { %v1946_v62 = vsub.s32 %v98_v41, %v101_v11  ;;  %v313_v28 = vsel %vm311_vm12, %v312_v13, %v1913_v50  ;;  %v478_v29 = vor.u32 8388608, %v477_v14  ;;  %vm504_vm15 = vcmp.lt.s32.totalorder %v483_v61, 3 }
  0x4a   :  { %v501_v30 = vor.u32 %v500_v20, %v499_v18  ;;  %v511_v32 = vsel %vm505_vm13, %v498_v16, 920167782  ;;  %vm503_vm0 = vcmp.lt.s32.totalorder %v483_v61, 2  ;;  %v510_v15 = vsel %vm502_vm14, %v489_v22, %v492_v23 }
  0x4b   :  { %v314_v34 = vadd.s32 %v313_v28, %v309_v25  ;;  %v512_v35 = vsel %vm504_vm15, %v495_v27, %v511_v32  ;;  %v104_v36 = vsub.s32 0, %v1946_v62  ;;  %v514_v37 = vsel %vm502_vm14, %v492_v23, %v495_v27 }
  0x4c   :  { %v518_v38 = vshll.u32 %v478_v29, 8  ;;  %v513_v39 = vsel %vm503_vm0, %v510_v15, %v512_v35  ;;  %v515_v40 = vsel %vm505_vm13, %v501_v30, 1326507024  ;;  %v1957_v41 = vmul.f32 0.068809696, %v1807_v0 }
  0x4d   :  { %v516_v42 = vsel %vm504_vm15, %v498_v16, %v515_v40  ;;  %v315_v43 = vadd.s32 536870912, %v314_v34  ;;  %v1566_v45 = vmin.u32 %v104_v36, %v1946_v62  ;;  %v486_v50 = vshrl.u32 %v1761_v17, %v485_v53 }
  0x4e   :  { %v517_v44 = vsel %vm503_vm0, %v514_v37, %v516_v42  ;;  %v1962_v46 = vmul.u32.u64.low %v518_v38, %v513_v39  ;;  %v1963_v47 = vmul.u32.u64.high %v518_v38, %v513_v39, %v1962_v46  ;;  %v689_v57 = vand.u32 2139095040, %v1957_v41 }
  0x4f   :  { %v1967_v51 = vmul.u32.u64.low %v518_v38, %v517_v44  ;;  %v1968_v55 = vmul.u32.u64.high %v518_v38, %v517_v44, %v1967_v51  ;;  %v507_v49 = vsel %vm505_vm13, %v495_v27, 2102212464  ;;  %v1972_v63 = vshrl.u32 %v315_v43, 30 }
  0x50   :  { %v690_v2 = vshrl.u32 %v689_v57, 23  ;;  %v106_v4 = vclz %v1566_v45  ;;  %v506_v5 = vsel %vm502_vm14, %v486_v50, %v489_v22  ;;  %v508_v6 = vsel %vm504_vm15, %v492_v23, %v507_v49 }
  0x51   :  { %v317_v9 = vshll.u32 %v1972_v63, 30  ;;  %v509_v53 = vsel %vm503_vm0, %v506_v5, %v508_v6  ;;  %v528_v11 = vadd.s32 1, %v1963_v47  ;;  %vm527_vm1 = vc.u32 %v1968_v55, %v1962_v46 }
  0x52   :  { %v1595_v8 = vadd.s32 4294967169, %v690_v2  ;;  %v1567_v10 = vadd.s32 4294967294, %v106_v4  ;;  %v525_v14 = vmul.u32 %v518_v38, %v509_v53  ;;  %v1986_v25 = vmul.f32 0.08601212, %v1807_v0 }
  0x53   :  { %v1981_v13 = vsub.s32 %v314_v34, %v317_v9  ;;  %v529_v16 = vsel %vm527_vm1, %v528_v11, %v1963_v47  ;;  %v94_v28 = vadd.s32 %v1857_v54, %v1864_v58  ;;  %v686_v15 = vand.u32 2147483647, %v1957_v41 }
  0x54   :  { %v696_v12 = vadd.s32 1, %v1595_v8  ;;  %vm1568_vm3 = vcmp.lt.s32.totalorder %v1567_v10, 0  ;;  %v530_v23 = vadd.s32 %v529_v16, %v525_v14  ;;  %v905_v35 = vand.u32 2139095040, %v1986_v25 }
  0x55   :  { %v109_v20 = vsel %vm1568_vm3, 0, %v1567_v10  ;;  %v320_v22 = vsub.s32 0, %v1981_v13  ;;  %v693_v42 = vand.u32 8388607, %v686_v15  ;;  %vm40_vm10 = vcmp.lt.s32.totalorder %v1810_v1, 0 }
  0x56   :  { %vm697_vm2 = vcmp.gt.s32.totalorder %v696_v12, 0  ;;  %v114_v27 = vsub.s32 4294967266, %v109_v20  ;;  %v110_v29 = vsub.s32 32, %v109_v20  ;;  %v531_v32 = vadd.s32 536870912, %v530_v23 }
  0x57   :  { %v698_v18 = vsel %vm697_vm2, %v696_v12, 0  ;;  %v1576_v30 = vmin.u32 %v320_v22, %v1981_v13  ;;  %v111_v37 = vshll.u32 %v1946_v62, %v109_v20  ;;  %v906_v43 = vshrl.u32 %v905_v35, 23 }
  0x58   :  { %v700_v61 = vand.u32 31, %v698_v18  ;;  %v115_v36 = vadd.s32 127, %v114_v27  ;;  %v112_v38 = vshrl.u32 %v94_v28, %v110_v29  ;;  %v1994_v40 = vshrl.u32 %v531_v32, 30 }
  0x59   :  { %v322_v39 = vclz %v1576_v30  ;;  %v699_v51 = vshrl.u32 %v698_v18, 5  ;;  %v694_v8 = vor.u32 8388608, %v693_v42  ;;  %v1605_v9 = vadd.s32 4294967169, %v906_v43 }
  0x5a   :  { %v701_v34 = vsub.s32 32, %v700_v61  ;;  %v703_v54 = vshll.u32 %v1761_v17, %v700_v61  ;;  %v706_v44 = vshll.u32 %v1762_v19, %v700_v61  ;;  %v712_v47 = vshll.u32 %v1764_v24, %v700_v61 }
  0x5b   :  { %v116_v50 = vshll.u32 %v115_v36, 23  ;;  %v709_v57 = vshll.u32 %v1763_v21, %v700_v61  ;;  %v533_v2 = vshll.u32 %v1994_v40, 30  ;;  %v715_v4 = vshll.u32 %v1765_v26, %v700_v61 }
  0x5c   :  { %v704_v58 = vshrl.u32 %v1762_v19, %v701_v34  ;;  %v707_v45 = vshrl.u32 %v1763_v21, %v701_v34  ;;  %v713_v62 = vshrl.u32 %v1765_v26, %v701_v34  ;;  %v710_v49 = vshrl.u32 %v1764_v24, %v701_v34 }
  0x5d   :  { %v716_v5 = vshrl.u32 %v1766_v33, %v701_v34  ;;  %v1577_v6 = vadd.s32 4294967294, %v322_v39  ;;  %v702_v10 = vshrl.u32 %v1761_v17, %v701_v34  ;;  %v113_v14 = vor.u32 %v112_v38, %v111_v37 }
  0x5e   :  { %v705_v53 = vor.u32 %v704_v58, %v703_v54  ;;  %v708_v11 = vor.u32 %v707_v45, %v706_v44  ;;  %v714_v12 = vor.u32 %v713_v62, %v712_v47  ;;  %v117_v16 = vor.u32 4788187, %v116_v50 }
  0x5f   :  { %v711_v18 = vor.u32 %v710_v49, %v709_v57  ;;  %vm718_vm4 = vcmp.lt.s32.totalorder %v699_v51, 1  ;;  %v2010_v20 = vsub.s32 %v530_v23, %v533_v2  ;;  %v717_v22 = vor.u32 %v716_v5, %v715_v4 }
  0x60   :  { %vm720_vm5 = vcmp.lt.s32.totalorder %v699_v51, 3  ;;  %vm721_vm6 = vcmp.lt.s32.totalorder %v699_v51, 4  ;;  %vm1578_vm7 = vcmp.lt.s32.totalorder %v1577_v6, 0  ;;  %vm719_vm8 = vcmp.lt.s32.totalorder %v699_v51, 2 }
  0x61   :  { %v734_v61 = vshll.u32 %v694_v8, 8  ;;  %v912_v27 = vadd.s32 1, %v1605_v9  ;;  %v722_v28 = vsel %vm718_vm4, %v702_v10, %v705_v53  ;;  %v723_v29 = vsel %vm721_vm6, %v711_v18, 2102212464 }
  0x62   :  { %v726_v30 = vsel %vm718_vm4, %v705_v53, %v708_v11  ;;  %v727_v32 = vsel %vm721_vm6, %v714_v12, 920167782  ;;  %v120_v34 = vcvt.s32.f32 %v113_v14  ;;  %v724_v35 = vsel %vm720_vm5, %v708_v11, %v723_v29 }
  0x63   :  { %v728_v36 = vsel %vm720_vm5, %v711_v18, %v727_v32  ;;  %v536_v23 = vsub.s32 0, %v2010_v20  ;;  %v730_v38 = vsel %vm718_vm4, %v708_v11, %v711_v18  ;;  %v731_v39 = vsel %vm721_vm6, %v717_v22, 1326507024 }
  0x64   :  { %v729_v37 = vsel %vm719_vm8, %v726_v30, %v728_v36  ;;  %v118_v42 = vand.u32 2147483647, %v117_v16  ;;  %v2020_v54 = vsel %vm1578_vm7, 0, %v1577_v6  ;;  %v725_v58 = vsel %vm719_vm8, %v722_v28, %v724_v35 }
  0x65   :  { %v732_v43 = vsel %vm720_vm5, %v714_v12, %v731_v39  ;;  %v2025_v45 = vmul.u32.u64.low %v734_v61, %v729_v37  ;;  %v2026_v47 = vmul.u32.u64.high %v734_v61, %v729_v37, %v2025_v45  ;;  %vm913_vm9 = vcmp.gt.s32.totalorder %v912_v27, 0 }
  0x66   :  { %v733_v44 = vsel %vm719_vm8, %v730_v38, %v732_v43  ;;  %v902_v57 = vand.u32 2147483647, %v1986_v25  ;;  %v914_v49 = vsel %vm913_vm9, %v912_v27, 0  ;;  %v124_v2 = vsub.s32 4, %v1921_v56 }
  0x67   :  { %v2029_v62 = vmul.u32.u64.low %v734_v61, %v733_v44  ;;  %v2030_v50 = vmul.u32.u64.high %v734_v61, %v733_v44, %v2029_v62  ;;  %v1586_v4 = vmin.u32 %v536_v23, %v2010_v20  ;;  %v916_v5 = vand.u32 31, %v914_v49 }
  0x68   :  { %v2035_v6 = vmul.f32 %v120_v34, %v118_v42  ;;  %v310_v51 = vadd.s32 %v1912_v48, %v1917_v52  ;;  %v326_v8 = vsub.s32 32, %v2020_v54  ;;  %v741_v9 = vmul.u32 %v734_v61, %v725_v58 }
  0x69   :  { %v327_v10 = vshll.u32 %v1981_v13, %v2020_v54  ;;  %v330_v53 = vsub.s32 4294967266, %v2020_v54  ;;  %v744_v11 = vadd.s32 1, %v2026_v47  ;;  %v917_v12 = vsub.s32 32, %v916_v5 }
  0x6a   :  { %vm743_vm11 = vc.u32 %v2030_v50, %v2025_v45  ;;  %v909_v14 = vand.u32 8388607, %v902_v57  ;;  %v922_v48 = vshll.u32 %v1762_v19, %v916_v5  ;;  %v2051_v52 = vmul.f32 0.10321454, %v1807_v0 }
  0x6b   :  { %v538_v16 = vclz %v1586_v4  ;;  %v745_v13 = vsel %vm743_vm11, %v744_v11, %v2026_v47  ;;  %v2054_v18 = vshrl.u32 %v914_v49, 5  ;;  %v919_v22 = vshll.u32 %v1761_v17, %v916_v5 }
  0x6c   :  { %v746_v61 = vadd.s32 %v745_v13, %v741_v9  ;;  %v923_v27 = vshrl.u32 %v1763_v21, %v917_v12  ;;  %v925_v28 = vshll.u32 %v1763_v21, %v916_v5  ;;  %v926_v29 = vshrl.u32 %v1764_v24, %v917_v12 }
  0x6d   :  { %v920_v30 = vshrl.u32 %v1762_v19, %v917_v12  ;;  %v928_v32 = vshll.u32 %v1764_v24, %v916_v5  ;;  %v929_v34 = vshrl.u32 %v1765_v26, %v917_v12  ;;  %v931_v35 = vshll.u32 %v1765_v26, %v916_v5 }
  0x6e   :  { %v747_v36 = vadd.s32 536870912, %v746_v61  ;;  %v924_v23 = vor.u32 %v923_v27, %v922_v48  ;;  %v927_v37 = vor.u32 %v926_v29, %v925_v28  ;;  %v932_v38 = vshrl.u32 %v1766_v33, %v917_v12 }
  0x6f   :  { %v331_v39 = vadd.s32 127, %v330_v53  ;;  %v910_v42 = vor.u32 8388608, %v909_v14  ;;  %v930_v54 = vor.u32 %v929_v34, %v928_v32  ;;  %vm934_vm12 = vcmp.lt.s32.totalorder %v2054_v18, 1 }
  0x70   :  { %v1587_v58 = vadd.s32 4294967294, %v538_v16  ;;  %v2066_v43 = vshrl.u32 %v747_v36, 30  ;;  %v933_v44 = vor.u32 %v932_v38, %v931_v35  ;;  %vm937_vm13 = vcmp.lt.s32.totalorder %v2054_v18, 4 }
  0x71   :  { %v328_v47 = vshrl.u32 %v310_v51, %v326_v8  ;;  %v921_v62 = vor.u32 %v920_v30, %v919_v22  ;;  %vm936_vm14 = vcmp.lt.s32.totalorder %v2054_v18, 3  ;;  %v1121_v49 = vand.u32 2139095040, %v2051_v52 }
  0x72   :  { %v749_v4 = vshll.u32 %v2066_v43, 30  ;;  %vm935_vm15 = vcmp.lt.s32.totalorder %v2054_v18, 2  ;;  %v943_v5 = vsel %vm937_vm13, %v930_v54, 920167782  ;;  %v946_v9 = vsel %vm934_vm12, %v924_v23, %v927_v37 }
  0x73   :  { %v125_v51 = vsel %vm40_vm10, %v124_v2, %v1921_v56  ;;  %v332_v8 = vshll.u32 %v331_v39, 23  ;;  %v947_v53 = vsel %vm937_vm13, %v933_v44, 1326507024  ;;  %v2086_v11 = vshll.u32 %v910_v42, 8 }
  0x74   :  { %vm1588_vm0 = vcmp.lt.s32.totalorder %v1587_v58, 0  ;;  %v2088_v14 = vsub.s32 %v746_v61, %v749_v4  ;;  %v918_v48 = vshrl.u32 %v1761_v17, %v917_v12  ;;  %v948_v16 = vsel %vm936_vm14, %v930_v54, %v947_v53 }
  0x75   :  { %v939_v56 = vsel %vm937_vm13, %v927_v37, 2102212464  ;;  %v942_v2 = vsel %vm934_vm12, %v921_v62, %v924_v23  ;;  %v944_v13 = vsel %vm936_vm14, %v927_v37, %v943_v5  ;;  %v949_v12 = vsel %vm935_vm15, %v946_v9, %v948_v16 }
  0x76   :  { %v122_v22 = vxor.u32 2147483648, %v2035_v6  ;;  %v329_v61 = vor.u32 %v328_v47, %v327_v10  ;;  %v752_v27 = vsub.s32 0, %v2088_v14  ;;  %v1122_v28 = vshrl.u32 %v1121_v49, 23 }
  0x77   :  { %v333_v29 = vor.u32 4788187, %v332_v8  ;;  %v541_v30 = vsel %vm1588_vm0, 0, %v1587_v58  ;;  %v2108_v32 = vmul.u32.u64.low %v2086_v11, %v949_v12  ;;  %v2109_v34 = vmul.u32.u64.high %v2086_v11, %v949_v12, %v2108_v32 }
  0x78   :  { %v1596_v35 = vmin.u32 %v752_v27, %v2088_v14  ;;  %v938_v36 = vsel %vm934_vm12, %v918_v48, %v921_v62  ;;  %v940_v37 = vsel %vm936_vm14, %v924_v23, %v939_v56  ;;  %v945_v10 = vsel %vm935_vm15, %v942_v2, %v944_v13 }
  0x79   :  { %vm2120_vm1 = vcmp.le.f32.partialorder %v38_v7, 0.7853982  ;;  %v141_v39 = vstv %s2069_s1  ;;  %v249_v42 = vstv %s2073_s30  ;;  %v546_v54 = vsub.s32 4294967266, %v541_v30 }
  0x7a   :  { %v1615_v58 = vadd.s32 4294967169, %v1122_v28  ;;  %v127_v23 = vsel %vm2120_vm1, 0, %v125_v51  ;;  %vm256_vm2 = vcmp.lt.s32.totalorder %v1814_v3, 0  ;;  %v941_v7 = vsel %vm935_vm15, %v938_v36, %v940_v37 }
  0x7b   :  { %v2136_v44 = vmul.u32.u64.low %v2086_v11, %v945_v10  ;;  %v2137_v47 = vmul.u32.u64.high %v2086_v11, %v945_v10, %v2136_v44  ;;  %v123_v62 = vsel %vm40_vm10, %v122_v22, %v2035_v6  ;;  %v334_v49 = vand.u32 2147483647, %v333_v29 }
  0x7c   :  { %v336_v4 = vcvt.s32.f32 %v329_v61  ;;  %v754_v5 = vclz %v1596_v35  ;;  %v357_v9 = vstv %s2093_s3  ;;  %v465_v8 = vstv %s2095_s4 }
  0x7d   :  { %v526_v51 = vadd.s32 %v1962_v46, %v1968_v55  ;;  %v542_v53 = vsub.s32 32, %v541_v30  ;;  %v547_v18 = vadd.s32 127, %v546_v54  ;;  %v957_v48 = vmul.u32 %v2086_v11, %v941_v7 }
  0x7e   :  { %vm959_vm3 = vc.u32 %v2109_v34, %v2136_v44  ;;  %v1128_v16 = vadd.s32 1, %v1615_v58  ;;  %v126_v6 = vsel %vm2120_vm1, %v1810_v1, %v123_v62  ;;  %v238_v56 = vadd.s32 3, %v127_v23 }
  0x7f   :  { %v340_v2 = vsub.s32 4, %v1972_v63  ;;  %v960_v13 = vadd.s32 1, %v2137_v47  ;;  %v337_v46 = vmul.f32 %v336_v4, %v334_v49  ;;  %v1597_v55 = vadd.s32 4294967294, %v754_v5 }
  0x80   :  { %v1118_v12 = vand.u32 2147483647, %v2051_v52  ;;  %vm1129_vm4 = vcmp.gt.s32.totalorder %v1128_v16, 0  ;;  %v543_v11 = vshll.u32 %v2010_v20, %v541_v30  ;;  %v544_v22 = vshrl.u32 %v526_v51, %v542_v53 }
  0x81   :  { %v961_v61 = vsel %vm959_vm3, %v960_v13, %v2137_v47  ;;  %v1130_v27 = vsel %vm1129_vm4, %v1128_v16, 0  ;;  %v548_v28 = vshll.u32 %v547_v18, 23  ;;  %1671 = vcosq.f32 %v126_v6 }
  0x82   :  { %v962_v35 = vadd.s32 %v961_v61, %v957_v48  ;;  %v2160_v36 = vand.u32 3, %v127_v23  ;;  %v2162_v37 = vand.u32 3, %v238_v56  ;;  %v1132_v10 = vand.u32 31, %v1130_v27 }
  0x83   :  { %1673 = vsinq.f32 %v126_v6  ;;  %v2167_v38 = vsel %vm256_vm2, %v340_v2, %v1972_v63  ;;  %vm1598_vm5 = vcmp.lt.s32.totalorder %v1597_v55, 0  ;;  %v338_v30 = vxor.u32 2147483648, %v337_v46 }
  0x84   :  { %v963_v20 = vadd.s32 536870912, %v962_v35  ;;  %v545_v54 = vor.u32 %v544_v22, %v543_v11  ;;  %v1125_v58 = vand.u32 8388607, %v1118_v12  ;;  %v1133_v7 = vsub.s32 32, %v1132_v10 }
  0x85   :  { %vm2173_vm6 = vcmp.le.f32.partialorder %v254_v59, 0.7853982  ;;  %v549_v47 = vor.u32 4788187, %v548_v28  ;;  %v556_v62 = vsub.s32 4, %v1994_v40  ;;  %v2183_v4 = vsel %vm1598_vm5, 0, %v1597_v55 }
  0x86   :  { %v2178_v49 = vshrl.u32 %v963_v20, 30  ;;  %v2181_v63 = vmul.f32 0.12041697, %v1807_v0  ;;  %v1135_v5 = vshll.u32 %v1761_v17, %v1132_v10  ;;  %v1138_v51 = vshll.u32 %v1762_v19, %v1132_v10 }
  0x87   :  { %v1144_v53 = vshll.u32 %v1764_v24, %v1132_v10  ;;  %v1136_v18 = vshrl.u32 %v1762_v19, %v1133_v7  ;;  %v1139_v48 = vshrl.u32 %v1763_v21, %v1133_v7  ;;  %v1145_v16 = vshrl.u32 %v1765_v26, %v1133_v7 }
  0x88   :  { %v965_v59 = vshll.u32 %v2178_v49, 30  ;;  %v339_v0 = vsel %vm256_vm2, %v338_v30, %v337_v46  ;;  %v552_v6 = vcvt.s32.f32 %v545_v54  ;;  %v1126_v56 = vor.u32 8388608, %v1125_v58 }
  0x89   :  { %v1131_v2 = vshrl.u32 %v1130_v27, 5  ;;  %v762_v13 = vsub.s32 4294967266, %v2183_v4  ;;  %v1141_v11 = vshll.u32 %v1763_v21, %v1132_v10  ;;  %v1142_v22 = vshrl.u32 %v1764_v24, %v1133_v7 }
  0x8a   :  { %v2195_v55 = vsub.s32 %v962_v35, %v965_v59  ;;  %v550_v61 = vand.u32 2147483647, %v549_v47  ;;  %v742_v28 = vadd.s32 %v2025_v45, %v2030_v50  ;;  %v1147_v20 = vshll.u32 %v1765_v26, %v1132_v10 }
  0x8b   :  { %v1148_v32 = vshrl.u32 %v1766_v33, %v1133_v7  ;;  %v1137_v30 = vor.u32 %v1136_v18, %v1135_v5  ;;  %v1140_v27 = vor.u32 %v1139_v48, %v1138_v51  ;;  %v1146_v54 = vor.u32 %v1145_v16, %v1144_v53  ;;  %v2204_v58 = vpop.eup %1671 }
  0x8c   :  { %v968_v46 = vsub.s32 0, %v2195_v55  ;;  %v758_v35 = vsub.s32 32, %v2183_v4  ;;  %vm1150_vm7 = vcmp.lt.s32.totalorder %v1131_v2, 1  ;;  %vm1153_vm8 = vcmp.lt.s32.totalorder %v1131_v2, 4 }
  0x8d   :  { %v2207_v59 = vshll.u32 %v1126_v56, 8  ;;  %v2209_v47 = vpop.eup %1673  ;;  %v763_v45 = vadd.s32 127, %v762_v13  ;;  %v1134_v10 = vshrl.u32 %v1761_v17, %v1133_v7  ;;  %v1143_v29 = vor.u32 %v1142_v22, %v1141_v11 }
  0x8e   :  { %v1606_v50 = vmin.u32 %v968_v46, %v2195_v55  ;;  %vm472_vm9 = vcmp.lt.s32.totalorder %v1831_v31, 0  ;;  %v1149_v5 = vor.u32 %v1148_v32, %v1147_v20  ;;  %vm1151_vm10 = vcmp.lt.s32.totalorder %v1131_v2, 2 }
  0x8f   :  { %vm1152_vm11 = vcmp.lt.s32.totalorder %v1131_v2, 3  ;;  %v1337_v51 = vand.u32 2139095040, %v2181_v63  ;;  %v1155_v18 = vsel %vm1153_vm8, %v1143_v29, 2102212464  ;;  %v1158_v48 = vsel %vm1150_vm7, %v1137_v30, %v1140_v27 }
  0x90   :  { %v970_v53 = vclz %v1606_v50  ;;  %v1159_v16 = vsel %vm1153_vm8, %v1146_v54, 920167782  ;;  %v342_v56 = vsel %vm2173_vm6, %v1814_v3, %v339_v0  ;;  %v553_v7 = vmul.f32 %v552_v6, %v550_v61 }
  0x91   :  { %v759_v13 = vshll.u32 %v2088_v14, %v2183_v4  ;;  %v760_v32 = vshrl.u32 %v742_v28, %v758_v35  ;;  %v764_v11 = vshll.u32 %v763_v45, 23  ;;  %v1154_v22 = vsel %vm1150_vm7, %v1134_v10, %v1137_v30 }
  0x92   :  { %v1160_v20 = vsel %vm1152_vm11, %v1143_v29, %v1159_v16  ;;  %v1162_v46 = vsel %vm1150_vm7, %v1140_v27, %v1143_v29  ;;  %vm133_vm12 = vcmp.eq.s32.totalorder %v2160_v36, 0  ;;  %vm2229_vm13 = vcmp.le.f32.partialorder %v470_v60, 0.7853982 }
  0x93   :  { %v1156_v0 = vsel %vm1152_vm11, %v1140_v27, %v1155_v18  ;;  %v1161_v14 = vsel %vm1151_vm10, %v1158_v48, %v1160_v20  ;;  %v1163_v4 = vsel %vm1153_vm8, %v1149_v5, 1326507024  ;;  %v1338_v6 = vshrl.u32 %v1337_v51, 23 }
  0x94   :  { %v1607_v61 = vadd.s32 4294967294, %v970_v53  ;;  %v1164_v28 = vsel %vm1152_vm11, %v1146_v54, %v1163_v4  ;;  %v2238_v29 = vmul.u32.u64.low %v2207_v59, %v1161_v14  ;;  %v2239_v30 = vmul.u32.u64.high %v2207_v59, %v1161_v14, %v2238_v29 }
  0x95   :  { %vm136_vm14 = vcmp.eq.s32.totalorder %v2160_v36, 2  ;;  %1675 = vcosq.f32 %v342_v56  ;;  %v1165_v60 = vsel %vm1151_vm10, %v1162_v46, %v1164_v28  ;;  %v1625_v35 = vadd.s32 4294967169, %v1338_v6 }
  0x96   :  { %vm132_vm15 = vcmp.lt.s32.totalorder %v2160_v36, 2  ;;  %vm240_vm0 = vcmp.lt.s32.totalorder %v2162_v37, 2  ;;  %v343_v27 = vsel %vm2173_vm6, 0, %v2167_v38  ;;  %v761_v54 = vor.u32 %v760_v32, %v759_v13 }
  0x97   :  { %v1157_v45 = vsel %vm1151_vm10, %v1154_v22, %v1156_v0  ;;  %v765_v10 = vor.u32 4788187, %v764_v11  ;;  %v2251_v5 = vmul.u32.u64.low %v2207_v59, %v1165_v60  ;;  %v2252_v51 = vmul.u32.u64.high %v2207_v59, %v1165_v60, %v2251_v5 }
  0x98   :  { %v1344_v53 = vadd.s32 1, %v1625_v35  ;;  %v554_v18 = vxor.u32 2147483648, %v553_v7  ;;  %v557_v48 = vsel %vm472_vm9, %v556_v62, %v1994_v40  ;;  %vm1608_vm1 = vcmp.lt.s32.totalorder %v1607_v61, 0 }
  0x99   :  { %v1176_v23 = vadd.s32 1, %v2239_v30  ;;  %v137_v38 = vxor.u32 2147483648, %v2204_v58  ;;  %1677 = vsinq.f32 %v342_v56  ;;  %v1173_v2 = vmul.u32 %v2207_v59, %v1157_v45 }
  0x9a   :  { %vm1345_vm2 = vcmp.gt.s32.totalorder %v1344_v53, 0  ;;  %v134_v16 = vxor.u32 2147483648, %v2209_v47  ;;  %vm241_vm3 = vcmp.eq.s32.totalorder %v2162_v37, 0  ;;  %vm244_vm4 = vcmp.eq.s32.totalorder %v2162_v37, 2 }
  0x9b   :  { %v1346_v13 = vsel %vm1345_vm2, %v1344_v53, 0  ;;  %v766_v32 = vand.u32 2147483647, %v765_v10  ;;  %v768_v11 = vcvt.s32.f32 %v761_v54  ;;  %v973_v22 = vsel %vm1608_vm1, 0, %v1607_v61 }
  0x9c   :  { %vm1175_vm5 = vc.u32 %v2252_v51, %v2238_v29  ;;  %v454_v40 = vadd.s32 3, %v343_v27  ;;  %v555_v62 = vsel %vm472_vm9, %v554_v18, %v553_v7  ;;  %v2271_v59 = vsel %vm2229_vm13, 0, %v557_v48 }
  0x9d   :  { %vm688_vm6 = vcmp.lt.s32.totalorder %v1957_v41, 0  ;;  %v1177_v56 = vsel %vm1175_vm5, %v1176_v23, %v2239_v30  ;;  %v138_v20 = vsel %vm136_vm14, %v137_v38, %v2209_v47  ;;  %v246_v46 = vsel %vm244_vm4, %v137_v38, %v2209_v47 }
  0x9e   :  { %v1178_v0 = vadd.s32 %v1177_v56, %v1173_v2  ;;  %v1348_v14 = vand.u32 31, %v1346_v13  ;;  %v135_v7 = vsel %vm133_vm12, %v2204_v58, %v134_v16  ;;  %v243_v4 = vsel %vm241_vm3, %v2204_v58, %v134_v16 }
  0x9f   :  { %v978_v6 = vsub.s32 4294967266, %v973_v22  ;;  %v1334_v61 = vand.u32 2147483647, %v2181_v63  ;;  %v2286_v28 = vpop.eup %1675  ;;  %v558_v30 = vsel %vm2229_vm13, %v1831_v31, %v555_v62  ;;  %v769_v47 = vmul.f32 %v768_v11, %v766_v32 }
  0xa0   :  { %v1179_v60 = vadd.s32 536870912, %v1178_v0  ;;  %v1349_v35 = vsub.s32 32, %v1348_v14  ;;  %v2291_v54 = vand.u32 3, %v343_v27  ;;  %v2293_v45 = vand.u32 3, %v454_v40 }
  0xa1   :  { %v958_v10 = vadd.s32 %v2136_v44, %v2109_v34  ;;  %v974_v58 = vsub.s32 32, %v973_v22  ;;  %v2299_v5 = vsel %vm132_vm15, %v135_v7, %v138_v20  ;;  %v2303_v53 = vsel %vm240_vm0, %v243_v4, %v246_v46 }
  0xa2   :  { %v2306_v50 = vadd.s32 3, %v2271_v59  ;;  %v2308_v18 = vshrl.u32 %v1179_v60, 30  ;;  %v353_v27 = vxor.u32 2147483648, %v2286_v28  ;;  %1679 = vcosq.f32 %v558_v30 }
  0xa3   :  { %v979_v48 = vadd.s32 127, %v978_v6  ;;  %v1341_v34 = vand.u32 8388607, %v1334_v61  ;;  %v2313_v44 = vpop.eup %1677  ;;  %v770_v36 = vxor.u32 2147483648, %v769_v47  ;;  %v1351_v37 = vshll.u32 %v1761_v17, %v1348_v14 }
  0xa4   :  { %v1181_v23 = vshll.u32 %v2308_v18, 30  ;;  %v1352_v38 = vshrl.u32 %v1762_v19, %v1349_v35  ;;  %v975_v2 = vshll.u32 %v2195_v55, %v973_v22  ;;  %v976_v16 = vshrl.u32 %v958_v10, %v974_v58 }
  0xa5   :  { %v1354_v32 = vshll.u32 %v1762_v19, %v1348_v14  ;;  %v1355_v11 = vshrl.u32 %v1763_v21, %v1349_v35  ;;  %v2323_v62 = vshrl.u32 %v1346_v13, 5  ;;  %v1357_v56 = vshll.u32 %v1763_v21, %v1348_v14 }
  0xa6   :  { %v2321_v40 = vsub.s32 %v1178_v0, %v1181_v23  ;;  %v1358_v20 = vshrl.u32 %v1764_v24, %v1349_v35  ;;  %v350_v46 = vxor.u32 2147483648, %v2313_v44  ;;  %vm352_vm7 = vcmp.eq.s32.totalorder %v2291_v54, 2 }
  0xa7   :  { %1681 = vsinq.f32 %v558_v30  ;;  %v980_v7 = vshll.u32 %v979_v48, 23  ;;  %v1360_v55 = vshll.u32 %v1764_v24, %v1348_v14  ;;  %vm349_vm8 = vcmp.eq.s32.totalorder %v2291_v54, 0 }
  0xa8   :  { %v771_v19 = vsel %vm688_vm6, %v770_v36, %v769_v47  ;;  %v1184_v13 = vsub.s32 0, %v2321_v40  ;;  %v1342_v22 = vor.u32 8388608, %v1341_v34  ;;  %v1353_v0 = vor.u32 %v1352_v38, %v1351_v37 }
  0xa9   :  { %vm2336_vm9 = vcmp.le.f32.partialorder %v686_v15, 0.7853982  ;;  %v1356_v4 = vor.u32 %v1355_v11, %v1354_v32  ;;  %v1361_v6 = vshrl.u32 %v1765_v26, %v1349_v35  ;;  %v1363_v24 = vshll.u32 %v1765_v26, %v1348_v14 }
  0xaa   :  { %v1364_v30 = vshrl.u32 %v1766_v33, %v1349_v35  ;;  %vm130_vm10 = vweird.f32 %v1810_v1  ;;  %v977_v47 = vor.u32 %v976_v16, %v975_v2  ;;  %v1616_v60 = vmin.u32 %v1184_v13, %v2321_v40 }
  0xab   :  { %v1359_v10 = vor.u32 %v1358_v20, %v1357_v56  ;;  %vm1366_vm11 = vcmp.lt.s32.totalorder %v2323_v62, 1  ;;  %vm460_vm12 = vcmp.eq.s32.totalorder %v2293_v45, 2  ;;  %v981_v15 = vor.u32 4788187, %v980_v7 }
  0xac   :  { %v1350_v58 = vshrl.u32 %v1761_v17, %v1349_v35  ;;  %v1362_v48 = vor.u32 %v1361_v6, %v1360_v55  ;;  %v1365_v34 = vor.u32 %v1364_v30, %v1363_v24  ;;  %vm348_vm13 = vcmp.lt.s32.totalorder %v2291_v54, 2  ;;  %v2352_v14 = vpop.eup %1679 }
  0xad   :  { %vm457_vm14 = vcmp.eq.s32.totalorder %v2293_v45, 0  ;;  %v1186_v26 = vclz %v1616_v60  ;;  %vm1368_vm15 = vcmp.lt.s32.totalorder %v2323_v62, 3  ;;  %vm1369_vm0 = vcmp.lt.s32.totalorder %v2323_v62, 4 }
  0xae   :  { %v1382_v33 = vshll.u32 %v1342_v22, 8  ;;  %v1174_v36 = vadd.s32 %v2238_v29, %v2252_v51  ;;  %vm1367_vm1 = vcmp.lt.s32.totalorder %v2323_v62, 2  ;;  %v1371_v17 = vsel %vm1369_vm0, %v1359_v10, 2102212464 }
  0xaf   :  { %v1374_v35 = vsel %vm1366_vm11, %v1353_v0, %v1356_v4  ;;  %v984_v23 = vcvt.s32.f32 %v977_v47  ;;  %v1617_v37 = vadd.s32 4294967294, %v1186_v26  ;;  %v1375_v38 = vsel %vm1369_vm0, %v1362_v48, 920167782 }
  0xb0   :  { %v1378_v2 = vsel %vm1366_vm11, %v1356_v4, %v1359_v10  ;;  %v982_v16 = vand.u32 2147483647, %v981_v15  ;;  %v1370_v32 = vsel %vm1366_vm11, %v1350_v58, %v1353_v0  ;;  %v1376_v11 = vsel %vm1368_vm15, %v1359_v10, %v1375_v38 }
  0xb1   :  { %v1379_v29 = vsel %vm1369_vm0, %v1365_v34, 1326507024  ;;  %vm346_vm2 = vweird.f32 %v1814_v3  ;;  %vm456_vm3 = vcmp.lt.s32.totalorder %v2293_v45, 2  ;;  %vm1618_vm4 = vcmp.lt.s32.totalorder %v1617_v37, 0  ;;  %v2373_v7 = vpop.eup %1681 }
  0xb2   :  { %v1372_v51 = vsel %vm1368_vm15, %v1356_v4, %v1371_v17  ;;  %v1377_v56 = vsel %vm1367_vm1, %v1374_v35, %v1376_v11  ;;  %v1380_v20 = vsel %vm1368_vm15, %v1362_v48, %v1379_v29  ;;  %v1189_v55 = vsel %vm1618_vm4, 0, %v1617_v37 }
  0xb3   :  { %v1381_v13 = vsel %vm1367_vm1, %v1378_v2, %v1380_v20  ;;  %v2377_v22 = vmul.u32.u64.low %v1382_v33, %v1377_v56  ;;  %v2378_v0 = vmul.u32.u64.high %v1382_v33, %v1377_v56, %v2377_v22  ;;  %v354_v4 = vsel %vm352_vm7, %v353_v27, %v2313_v44 }
  0xb4   :  { %v1190_v6 = vsub.s32 32, %v1189_v55  ;;  %v1191_v24 = vshll.u32 %v2321_v40, %v1189_v55  ;;  %v1194_v30 = vsub.s32 4294967266, %v1189_v55  ;;  %v351_v47 = vsel %vm349_vm8, %v2286_v28, %v350_v46 }
  0xb5   :  { %v1373_v60 = vsel %vm1367_vm1, %v1370_v32, %v1372_v51  ;;  %v2394_v10 = vmul.u32.u64.low %v1382_v33, %v1381_v13  ;;  %v2395_v15 = vmul.u32.u64.high %v1382_v33, %v1381_v13, %v2394_v10  ;;  %v774_v58 = vsel %vm2336_vm9, %v1957_v41, %v771_v19 }
  0xb6   :  { %vm2402_vm5 = vcmp.le.f32.partialorder %v902_v57, 0.7853982  ;;  %v985_v48 = vmul.f32 %v984_v23, %v982_v16  ;;  %v1192_v34 = vshrl.u32 %v1174_v36, %v1190_v6  ;;  %v1195_v26 = vadd.s32 127, %v1194_v30 }
  0xb7   :  { %v140_v62 = vsel %vm130_vm10, nan, %v2299_v5  ;;  %v248_v17 = vsel %vm130_vm10, nan, %v2303_v53  ;;  %v772_v35 = vsub.s32 4, %v2066_v43  ;;  %v1392_v19 = vadd.s32 1, %v2378_v0 }
  0xb8   :  { %v462_v57 = vsel %vm460_vm12, %v353_v27, %v2313_v44  ;;  %v1193_v36 = vor.u32 %v1192_v34, %v1191_v24  ;;  %v1196_v23 = vshll.u32 %v1195_v26, 23  ;;  %v1389_v37 = vmul.u32 %v1382_v33, %v1373_v60 }
  0xb9   :  { %v355_v5 = vsel %vm348_vm13, %v351_v47, %v354_v4  ;;  %v459_v1 = vsel %vm457_vm14, %v2286_v28, %v350_v46  ;;  %1683 = vcosq.f32 %v774_v58  ;;  %vm1391_vm7 = vc.u32 %v2395_v15, %v2377_v22 }
  0xba   :  { %1685 = vsinq.f32 %v774_v58  ;;  %v986_v53 = vxor.u32 2147483648, %v985_v48  ;;  %v1197_v27 = vor.u32 4788187, %v1196_v23  ;;  %v1200_v38 = vcvt.s32.f32 %v1193_v36 }
  0xbb   :  { %v563_v2 = vand.u32 3, %v2271_v59  ;;  %v773_v54 = vsel %vm688_vm6, %v772_v35, %v2066_v43  ;;  %vm904_vm8 = vcmp.lt.s32.totalorder %v1986_v25, 0  ;;  %v1393_v44 = vsel %vm1391_vm7, %v1392_v19, %v2378_v0 }
  0xbc   :  { %v142_v28 = vmul.f32 %v141_v39, %v140_v62  ;;  %v250_v46 = vmul.f32 %v249_v42, %v248_v17  ;;  %v1198_v33 = vand.u32 2147483647, %v1197_v27  ;;  %v1394_v16 = vadd.s32 %v1393_v44, %v1389_v37 }
  0xbd   :  { %v356_v32 = vsel %vm346_vm2, nan, %v355_v5  ;;  %v463_v59 = vsel %vm456_vm3, %v459_v1, %v462_v57  ;;  %v671_v11 = vand.u32 3, %v2306_v50  ;;  %vm1120_vm6 = vcmp.lt.s32.totalorder %v2051_v52, 0 }
  0xbe   :  { %vm562_vm10 = vweird.f32 %v1831_v31  ;;  %v775_v43 = vsel %vm2336_vm9, 0, %v773_v54  ;;  %v987_v39 = vsel %vm904_vm8, %v986_v53, %v985_v48  ;;  %v1201_v42 = vmul.f32 %v1200_v38, %v1198_v33 }
  0xbf   :  { %v1395_v29 = vadd.s32 536870912, %v1394_v16  ;;  %vm565_vm11 = vcmp.eq.s32.totalorder %v563_v2, 0  ;;  %v566_v51 = vxor.u32 2147483648, %v2373_v7  ;;  %vm568_vm12 = vcmp.eq.s32.totalorder %v563_v2, 2 }
  0xc0   :  { %v569_v45 = vxor.u32 2147483648, %v2352_v14  ;;  %v251_v50 = vadd.f32 %v250_v46, %v142_v28  ;;  %v358_v56 = vmul.f32 %v357_v9, %v356_v32  ;;  %v464_v20 = vsel %vm346_vm2, nan, %v463_v59 }
  0xc1   :  { %v2455_v21 = vshrl.u32 %v1395_v29, 30  ;;  %vm564_vm9 = vcmp.lt.s32.totalorder %v563_v2, 2  ;;  %vm672_vm13 = vcmp.lt.s32.totalorder %v671_v11, 2  ;;  %v886_v55 = vadd.s32 3, %v775_v43 }
  0xc2   :  { %v990_v13 = vsel %vm2402_vm5, %v1986_v25, %v987_v39  ;;  %vm673_vm14 = vcmp.eq.s32.totalorder %v671_v11, 0  ;;  %vm676_vm15 = vcmp.eq.s32.totalorder %v671_v11, 2  ;;  %v1202_v0 = vxor.u32 2147483648, %v1201_v42 }
  0xc3   :  { %v1397_v4 = vshll.u32 %v2455_v21, 30  ;;  %v1684_v6 = vpop.eup %1683  ;;  %v466_v9 = vmul.f32 %v465_v8, %v464_v20  ;;  %v567_v3 = vsel %vm565_vm11, %v2352_v14, %v566_v51  ;;  %v570_v24 = vsel %vm568_vm12, %v569_v45, %v2373_v7 }
  0xc4   :  { %v988_v30 = vsub.s32 4, %v2178_v49  ;;  %v1686_v47 = vpop.eup %1685  ;;  %v359_v60 = vadd.f32 %v358_v56, %v251_v50  ;;  %v779_v10 = vand.u32 3, %v775_v43  ;;  %1687 = vcosq.f32 %v990_v13 }
  0xc5   :  { %v2468_v58 = vsub.s32 %v1394_v16, %v1397_v4  ;;  %v675_v48 = vsel %vm673_vm14, %v2352_v14, %v566_v51  ;;  %v678_v34 = vsel %vm676_vm15, %v569_v45, %v2373_v7  ;;  %v887_v26 = vand.u32 3, %v886_v55 }
  0xc6   :  { %1689 = vsinq.f32 %v990_v13  ;;  %v571_v8 = vsel %vm564_vm9, %v567_v3, %v570_v24  ;;  %vm2475_vm0 = vcmp.le.f32.partialorder %v1118_v12, 0.7853982  ;;  %v1203_v17 = vsel %vm1120_vm6, %v1202_v0, %v1201_v42 }
  0xc7   :  { %v1400_v35 = vsub.s32 0, %v2468_v58  ;;  %vm778_vm1 = vweird.f32 %v1957_v41  ;;  %v782_v14 = vxor.u32 2147483648, %v1686_v47  ;;  %v785_v7 = vxor.u32 2147483648, %v1684_v6 }
  0xc8   :  { %v989_v19 = vsel %vm904_vm8, %v988_v30, %v2178_v49  ;;  %v679_v12 = vsel %vm672_vm13, %v675_v48, %v678_v34  ;;  %vm781_vm2 = vcmp.eq.s32.totalorder %v779_v10, 0  ;;  %vm784_vm3 = vcmp.eq.s32.totalorder %v779_v10, 2 }
  0xc9   :  { %v1626_v57 = vmin.u32 %v1400_v35, %v2468_v58  ;;  %v467_v36 = vadd.f32 %v466_v9, %v359_v60  ;;  %v572_v23 = vsel %vm562_vm10, nan, %v571_v8  ;;  %vm889_vm4 = vcmp.eq.s32.totalorder %v887_v26, 0 }
  0xca   :  { %v1206_v37 = vsel %vm2475_vm0, %v2051_v52, %v1203_v17  ;;  %vm892_vm7 = vcmp.eq.s32.totalorder %v887_v26, 2  ;;  %v991_v49 = vsel %vm2402_vm5, 0, %v989_v19  ;;  %v1204_v5 = vsub.s32 4, %v2308_v18 }
  0xcb   :  { %v1402_v1 = vclz %v1626_v57  ;;  %v680_v53 = vsel %vm562_vm10, nan, %v679_v12  ;;  %vm780_vm8 = vcmp.lt.s32.totalorder %v779_v10, 2  ;;  %v783_v27 = vsel %vm781_vm2, %v1684_v6, %v782_v14 }
  0xcc   :  { %v786_v38 = vsel %vm784_vm3, %v785_v7, %v1686_v47  ;;  %v2583_v2 = vstv %s2126_s5  ;;  %vm888_vm11 = vcmp.lt.s32.totalorder %v887_v26, 2  ;;  %1691 = vcosq.f32 %v1206_v37 }
  0xcd   :  { %v574_v54 = vmul.f32 %v2583_v2, %v572_v23  ;;  %v1627_v44 = vadd.s32 4294967294, %v1402_v1  ;;  %v891_v40 = vsel %vm889_vm4, %v1684_v6, %v782_v14  ;;  %v894_v28 = vsel %vm892_vm7, %v785_v7, %v1686_v47 }
  0xce   :  { %v1102_v46 = vadd.s32 3, %v991_v49  ;;  %1693 = vsinq.f32 %v1206_v37  ;;  %v1688_v33 = vpop.eup %1687  ;;  %v787_v16 = vsel %vm780_vm8, %v783_v27, %v786_v38  ;;  %v1205_v31 = vsel %vm1120_vm6, %v1204_v5, %v2308_v18 }
  0xcf   :  { %v1390_v32 = vadd.s32 %v2377_v22, %v2395_v15  ;;  %vm1628_vm5 = vcmp.lt.s32.totalorder %v1627_v44, 0  ;;  %v2584_v11 = vstv %s2128_s6  ;;  %v789_v39 = vstv %s2482_s7 }
  0xd0   :  { %v1690_v59 = vpop.eup %1689  ;;  %v682_v43 = vmul.f32 %v2584_v11, %v680_v53  ;;  %v995_v42 = vand.u32 3, %v991_v49  ;;  %v1405_v29 = vsel %vm1628_vm5, 0, %v1627_v44  ;;  %v575_v51 = vadd.f32 %v574_v54, %v467_v36 }
  0xd1   :  { %v1406_v45 = vsub.s32 32, %v1405_v29  ;;  %v1407_v50 = vshll.u32 %v2468_v58, %v1405_v29  ;;  %v1410_v56 = vsub.s32 4294967266, %v1405_v29  ;;  %v788_v20 = vsel %vm778_vm1, nan, %v787_v16 }
  0xd2   :  { %v895_v18 = vsel %vm888_vm11, %v891_v40, %v894_v28  ;;  %v1103_v55 = vand.u32 3, %v1102_v46  ;;  %v1207_v22 = vsel %vm2475_vm0, 0, %v1205_v31  ;;  %v998_v15 = vxor.u32 2147483648, %v1690_v59 }
  0xd3   :  { %v1001_v13 = vxor.u32 2147483648, %v1688_v33  ;;  %v1408_v0 = vshrl.u32 %v1390_v32, %v1406_v45  ;;  %v1411_v4 = vadd.s32 127, %v1410_v56  ;;  %v897_v6 = vstv %s2500_s8 }
  0xd4   :  { %vm997_vm6 = vcmp.eq.s32.totalorder %v995_v42, 0  ;;  %vm1000_vm10 = vcmp.eq.s32.totalorder %v995_v42, 2  ;;  %v683_v9 = vadd.f32 %v682_v43, %v575_v51  ;;  %vm996_vm12 = vcmp.lt.s32.totalorder %v995_v42, 2 }
  0xd5   :  { %v1409_v3 = vor.u32 %v1408_v0, %v1407_v50  ;;  %v1412_v24 = vshll.u32 %v1411_v4, 23  ;;  %v790_v30 = vmul.f32 %v789_v39, %v788_v20  ;;  %v896_v47 = vsel %vm778_vm1, nan, %v895_v18 }
  0xd6   :  { %vm1108_vm9 = vcmp.eq.s32.totalorder %v1103_v55, 2  ;;  %v1318_v60 = vadd.s32 3, %v1207_v22  ;;  %v1692_v10 = vpop.eup %1691  ;;  %v999_v58 = vsel %vm997_vm6, %v1688_v33, %v998_v15  ;;  %v1002_v48 = vsel %vm1000_vm10, %v1001_v13, %v1690_v59 }
  0xd7   :  { %v1413_v34 = vor.u32 4788187, %v1412_v24  ;;  %v1416_v26 = vcvt.s32.f32 %v1409_v3  ;;  %vm994_vm13 = vweird.f32 %v1986_v25  ;;  %vm1105_vm14 = vcmp.eq.s32.totalorder %v1103_v55, 0 }
  0xd8   :  { %v1694_v8 = vpop.eup %1693  ;;  %v1211_v62 = vand.u32 3, %v1207_v22  ;;  %v898_v17 = vmul.f32 %v897_v6, %v896_v47  ;;  %vm1104_vm15 = vcmp.lt.s32.totalorder %v1103_v55, 2  ;;  %v1420_v41 = vsub.s32 4, %v2455_v21 }
  0xd9   :  { %v1414_v35 = vand.u32 2147483647, %v1413_v34  ;;  %v791_v14 = vadd.f32 %v790_v30, %v683_v9  ;;  %v1003_v7 = vsel %vm996_vm12, %v999_v58, %v1002_v48  ;;  %v1110_v19 = vsel %vm1108_vm9, %v1001_v13, %v1690_v59 }
  0xda   :  { %v1319_v12 = vand.u32 3, %v1318_v60  ;;  %v1107_v57 = vsel %vm1105_vm14, %v1688_v33, %v998_v15  ;;  %v1214_v36 = vxor.u32 2147483648, %v1694_v8  ;;  %v1217_v23 = vxor.u32 2147483648, %v1692_v10 }
  0xdb   :  { %v1417_v37 = vmul.f32 %v1416_v26, %v1414_v35  ;;  %v1005_v49 = vstv %s2519_s9  ;;  %vm1213_vm0 = vcmp.eq.s32.totalorder %v1211_v62, 0  ;;  %vm1216_vm1 = vcmp.eq.s32.totalorder %v1211_v62, 2 }
  0xdc   :  { %vm1336_vm2 = vcmp.lt.s32.totalorder %v2181_v63, 0  ;;  %v1004_v5 = vsel %vm994_vm13, nan, %v1003_v7  ;;  %vm1335_vm3 = vcmp.le.f32.partialorder %v1334_v61, 0.7853982  ;;  %v899_v27 = vadd.f32 %v898_v17, %v791_v14 }
  0xdd   :  { %v1418_v1 = vxor.u32 2147483648, %v1417_v37  ;;  %v1421_v53 = vsel %vm1336_vm2, %v1420_v41, %v2455_v21  ;;  %v1111_v38 = vsel %vm1104_vm15, %v1107_v57, %v1110_v19  ;;  %vm1212_vm4 = vcmp.lt.s32.totalorder %v1211_v62, 2 }
  0xde   :  { %v1215_v2 = vsel %vm1213_vm0, %v1692_v10, %v1214_v36  ;;  %v1218_v54 = vsel %vm1216_vm1, %v1217_v23, %v1694_v8  ;;  %vm1321_vm7 = vcmp.eq.s32.totalorder %v1319_v12, 0  ;;  %v1006_v40 = vmul.f32 %v1005_v49, %v1004_v5 }
  0xdf   :  { %v1419_v44 = vsel %vm1336_vm2, %v1418_v1, %v1417_v37  ;;  %vm1324_vm8 = vcmp.eq.s32.totalorder %v1319_v12, 2  ;;  %v1423_v46 = vsel %vm1335_vm3, 0, %v1421_v53  ;;  %v1112_v61 = vsel %vm994_vm13, nan, %v1111_v38 }
  0xe0   :  { %v1422_v28 = vsel %vm1335_vm3, %v2181_v63, %v1419_v44  ;;  %v1113_v33 = vstv %s2524_s10  ;;  %vm1210_vm11 = vweird.f32 %v2051_v52  ;;  %v1219_v21 = vsel %vm1212_vm4, %v1215_v2, %v1218_v54 }
  0xe1   :  { %1695 = vcosq.f32 %v1422_v28  ;;  %vm1320_vm5 = vcmp.lt.s32.totalorder %v1319_v12, 2  ;;  %v1323_v16 = vsel %vm1321_vm7, %v1692_v10, %v1214_v36  ;;  %v1326_v31 = vsel %vm1324_vm8, %v1217_v23, %v1694_v8 }
  0xe2   :  { %1697 = vsinq.f32 %v1422_v28  ;;  %v1534_v32 = vadd.s32 3, %v1423_v46  ;;  %v1007_v59 = vadd.f32 %v1006_v40, %v899_v27  ;;  %v1114_v11 = vmul.f32 %v1113_v33, %v1112_v61 }
  0xe3   :  { %v1220_v43 = vsel %vm1210_vm11, nan, %v1219_v21  ;;  %v1221_v39 = vstv %s2533_s11  ;;  %v1327_v42 = vsel %vm1320_vm5, %v1323_v16, %v1326_v31  ;;  %v1427_v25 = vand.u32 3, %v1423_v46 }
  0xe4   :  { %v1535_v29 = vand.u32 3, %v1534_v32  ;;  %v1115_v51 = vadd.f32 %v1114_v11, %v1007_v59  ;;  %v1222_v45 = vmul.f32 %v1221_v39, %v1220_v43  ;;  %v1328_v50 = vsel %vm1210_vm11, nan, %v1327_v42 }
  0xe5   :  { %v1329_v56 = vstv %s1619_s12  ;;  %vm1429_vm6 = vcmp.eq.s32.totalorder %v1427_v25, 0  ;;  %vm1432_vm10 = vcmp.eq.s32.totalorder %v1427_v25, 2  ;;  %vm1428_vm13 = vcmp.lt.s32.totalorder %v1427_v25, 2 }
  0xe6   :  { %vm1540_vm12 = vcmp.eq.s32.totalorder %v1535_v29, 2  ;;  %v1223_v55 = vadd.f32 %v1222_v45, %v1115_v51  ;;  %v1330_v22 = vmul.f32 %v1329_v56, %v1328_v50  ;;  %vm1537_vm9 = vcmp.eq.s32.totalorder %v1535_v29, 0 }
  0xe7   :  { %vm1536_vm14 = vcmp.lt.s32.totalorder %v1535_v29, 2  ;;  %vm1426_vm15 = vweird.f32 %v2181_v63  ;;  %v1437_v6 = vstv %s2547_s13  ;;  %v1545_v3 = vstv %s2549_s14 }
  0xe8   :  { %v1331_v24 = vadd.f32 %v1330_v22, %v1223_v55 }
  0xeb   :  { %v1696_v20 = vpop.eup %1695 }
  0xec   :  { %v1698_v18 = vpop.eup %1697  ;;  %v1433_v15 = vxor.u32 2147483648, %v1696_v20 }
  0xed   :  { %v1430_v13 = vxor.u32 2147483648, %v1698_v18 }
  0xee   :  { %v1434_v0 = vsel %vm1432_vm10, %v1433_v15, %v1698_v18  ;;  %v1542_v52 = vsel %vm1540_vm12, %v1433_v15, %v1698_v18 }
  0xef   :  { %v1431_v4 = vsel %vm1429_vm6, %v1696_v20, %v1430_v13  ;;  %v1539_v9 = vsel %vm1537_vm9, %v1696_v20, %v1430_v13 }
  0xf0   :  { %v1435_v30 = vsel %vm1428_vm13, %v1431_v4, %v1434_v0  ;;  %v1543_v47 = vsel %vm1536_vm14, %v1539_v9, %v1542_v52 }
  0xf1   :  { %v1436_v60 = vsel %vm1426_vm15, nan, %v1435_v30  ;;  %v1544_v10 = vsel %vm1426_vm15, nan, %v1543_v47 }
  0xf2   :  { %v1438_v58 = vmul.f32 %v1437_v6, %v1436_v60  ;;  %v1546_v48 = vmul.f32 %v1545_v3, %v1544_v10 }
  0xf4   :  { %v1439_v34 = vadd.f32 %v1438_v58, %v1331_v24 }
  0xf6   :  { %v1547_v26 = vadd.f32 %v1546_v48, %v1439_v34 }
  0xf8   :  { %1548 = vst [vmem:[#allocation7] sm:$0xff] %v1547_v26 }
  0xf9   :  { %1742 = shalt.err (!%p1739_p1)
}
  0xfa   :  { %s1743_s20 = scalar_lea.hbm %s2570_s2, 128 }
  0xfb   :  { %p1744_p2 = scmp.ne.s32.totalorder %s2570_s2, %s1743_s20  ;;  %p1747_p3 = scmp.lt.u32.totalorder %s1743_s20, %s2570_s2 }
  0xfd   :  { %p1749_p4 = pnand %p1747_p3, %p1744_p2 }
  0xff   :  { %1752 = shalt.err (!%p1749_p4)
}
 0x100   :  { %1558 = dma.vmem_to_hbm [thread:$0]  %s1556_s16, 128, %s2570_s2, [#allocation4]  }
 0x101   :  { %1757 = dma.done.wait [#allocation4], 128  }
 0x102   :  { %1758 = vsyncadd [#allocation4], 4294967168 }
 0x103   :  { %1562 = vsyncpa [#allocation3], 1 }
 0x104   :  { %1563 = vsyncpa [#allocation4], 1 }
 0x105   :  { %1564 = vsyncpa [#allocation5], 1 }

</bundles_post_ra>
